<compile_context>
chip_gen: v6e
topology: v6e:2x2x1
jax: 0.10.0
libtpu: 0.0.40
codegen_flags: <defaults>
</compile_context>

<pallas_src>
import functools

import jax
import jax.numpy as jnp
from jax import lax
from jax.experimental import pallas as pl
from jax.experimental.pallas import tpu as pltpu

_LANES = 512          # lane-dense slab width (multiple of 128)
_MAX_BLOCK_ROWS = 1024  # 1024 x 512 f32 = 2 MiB per tile; x2 (in+out) x2 (double buffer) = 8 MiB


def _round_up(a: int, m: int) -> int:
    return (a + m - 1) // m * m


def _dropout_kernel(seed_ref, x_ref, o_ref, *, threshold, scale, block_rows):
    shp = x_ref.shape  # (block_rows, _LANES)

    # Global element index of every lane in this tile. Deterministic function
    # of (grid step, position) -> safe under "parallel" dimension semantics.
    pid = pl.program_id(0)
    row = lax.broadcasted_iota(jnp.int32, shp, 0)
    lane = lax.broadcasted_iota(jnp.int32, shp, 1)
    idx = (pid * block_rows + row) * shp[1] + lane

    # Counter-based hash (murmur3 finalizer) -> uniform uint32 per element.
    seed_u = seed_ref[0].astype(jnp.uint32) * jnp.uint32(0x9E3779B9)
    h = idx.astype(jnp.uint32) + seed_u
    h = (h ^ (h >> 16)) * jnp.uint32(0x85EBCA6B)
    h = (h ^ (h >> 13)) * jnp.uint32(0xC2B2AE35)
    h = h ^ (h >> 16)

    # Integer-domain threshold: drop iff h < round(p * 2^32).
    keep = h >= jnp.uint32(threshold)

    xv = x_ref[...]
    scale_c = jnp.asarray(scale, dtype=xv.dtype)  # native-dtype compute
    o_ref[...] = jnp.where(keep, xv * scale_c, jnp.zeros_like(xv))


def drop_path(x, p: float, training: bool, seed: int = 0):
    """Forward pass of DropPath: identity if p==0 or eval; else inverted dropout."""
    p = float(p)
    if p == 0.0 or not training:
        return x  # identity branch, matches the PyTorch module
    if p >= 1.0:
        return jnp.zeros_like(x)

    orig_shape = x.shape
    n = x.size

    # Lane-dense slab [rows, _LANES]; pad only when the size is not aligned.
    rows = _round_up(_round_up(n, _LANES) // _LANES, 8)
    n_pad = rows * _LANES
    flat = jnp.ravel(x)
    if n_pad != n:
        flat = jnp.pad(flat, (0, n_pad - n))
    x2d = flat.reshape(rows, _LANES)

    block_rows = min(_MAX_BLOCK_ROWS, rows)
    grid = ((rows + block_rows - 1) // block_rows,)

    threshold = min(int(round(p * (2.0 ** 32))), 2 ** 32 - 1)
    scale = 1.0 / (1.0 - p)
    seed_arr = jnp.asarray([seed], dtype=jnp.int32)

    kernel = functools.partial(
        _dropout_kernel, threshold=threshold, scale=scale, block_rows=block_rows
    )
    out2d = pl.pallas_call(
        kernel,
        out_shape=jax.ShapeDtypeStruct((rows, _LANES), x.dtype),
        grid_spec=pltpu.PrefetchScalarGridSpec(
            num_scalar_prefetch=1,
            grid=grid,
            in_specs=[pl.BlockSpec((block_rows, _LANES), lambda i, seed: (i, 0))],
            out_specs=pl.BlockSpec((block_rows, _LANES), lambda i, seed: (i, 0)),
        ),
        compiler_params=pltpu.CompilerParams(
            dimension_semantics=("parallel",),
        ),
    )(seed_arr, x2d)

    out_flat = out2d.reshape(-1)
    if n_pad != n:
        out_flat = out_flat[:n]
    return out_flat.reshape(orig_shape)


if __name__ == "__main__":
    key = jax.random.PRNGKey(0)
    # Small NCHW input consistent with typical use of DropPath inside a convnet.
    x = jax.random.normal(key, (2, 4, 16, 16), dtype=jnp.float32)
    p = 0.25

    # Training path (actual dropout kernel).
    y_train = jax.block_until_ready(drop_path(x, p=p, training=True, seed=0))
    assert y_train.shape == x.shape and y_train.dtype == x.dtype

    # Surviving elements are exactly x / (1 - p); dropped ones are 0.
    kept = y_train != 0.0
    scaled = x / (1.0 - p)
    assert bool(jnp.all(jnp.where(kept, jnp.abs(y_train - scaled) < 1e-5, True)))

    # Keep fraction should be near 1 - p (very loose bound: non-flaky).
    frac = float(jnp.mean(kept.astype(jnp.float32)))
    assert 0.5 < frac < 0.95, frac

    # Same seed -> identical mask (deterministic, core-placement invariant).
    y_again = jax.block_until_ready(drop_path(x, p=p, training=True, seed=0))
    assert bool(jnp.all(y_train == y_again))

    # Eval / p==0 paths are identity.
    y_eval = jax.block_until_ready(drop_path(x, p=p, training=False))
    assert bool(jnp.all(y_eval == x))
    y_p0 = jax.block_until_ready(drop_path(x, p=0.0, training=True))
    assert bool(jnp.all(y_p0 == x))

    print("KERNEL_OK")
</pallas_src>

<mosaic_0001>
module attributes {stable_mosaic.version = 11 : i64} {
  func.func @_dropout_kernel(%arg0: i32, %arg1: memref<1xi32, #tpu.memory_space<smem>>, %arg2: memref<8x512xf32, #tpu.memory_space<vmem>>, %arg3: memref<8x512xf32, #tpu.memory_space<vmem>>) attributes {dimension_semantics = [#tpu.dimension_semantics<parallel>], iteration_bounds = array<i64: 1>, scalar_prefetch = 1 : i64, scratch_operands = 0 : i64, tpu.core_type = #tpu.core_type<tc>, window_params = [{transform_indices = @transform_0, window_bounds = array<i64: 8, 512>}, {transform_indices = @transform_1, window_bounds = array<i64: 8, 512>}]} {
    %0 = tpu.iota {dimensions = array<i32: 0>} : vector<8x512xi32>
    %1 = tpu.iota {dimensions = array<i32: 1>} : vector<8x512xi32>
    %c8_i32 = arith.constant 8 : i32
    %2 = arith.muli %arg0, %c8_i32 : i32
    %3 = vector.broadcast %2 : i32 to vector<8x512xi32>
    %4 = arith.addi %3, %0 : vector<8x512xi32>
    %c512_i32 = arith.constant 512 : i32
    %5 = vector.broadcast %c512_i32 : i32 to vector<8x512xi32>
    %6 = arith.muli %4, %5 : vector<8x512xi32>
    %7 = arith.addi %6, %1 : vector<8x512xi32>
    %c0 = arith.constant 0 : index
    %8 = memref.load %arg1[%c0] : memref<1xi32, #tpu.memory_space<smem>>
    %c-1640531527_i32 = arith.constant -1640531527 : i32
    %9 = arith.muli %8, %c-1640531527_i32 : i32
    %10 = vector.broadcast %9 : i32 to vector<8x512xi32>
    %11 = arith.addi %7, %10 : vector<8x512xi32>
    %c16_i32 = arith.constant 16 : i32
    %12 = vector.broadcast %c16_i32 : i32 to vector<8x512xi32>
    %13 = arith.shrui %11, %12 : vector<8x512xi32>
    %14 = arith.xori %11, %13 : vector<8x512xi32>
    %c-2048144789_i32 = arith.constant -2048144789 : i32
    %15 = vector.broadcast %c-2048144789_i32 : i32 to vector<8x512xi32>
    %16 = arith.muli %14, %15 : vector<8x512xi32>
    %c13_i32 = arith.constant 13 : i32
    %17 = vector.broadcast %c13_i32 : i32 to vector<8x512xi32>
    %18 = arith.shrui %16, %17 : vector<8x512xi32>
    %19 = arith.xori %16, %18 : vector<8x512xi32>
    %c-1028477387_i32 = arith.constant -1028477387 : i32
    %20 = vector.broadcast %c-1028477387_i32 : i32 to vector<8x512xi32>
    %21 = arith.muli %19, %20 : vector<8x512xi32>
    %c16_i32_0 = arith.constant 16 : i32
    %22 = vector.broadcast %c16_i32_0 : i32 to vector<8x512xi32>
    %23 = arith.shrui %21, %22 : vector<8x512xi32>
    %24 = arith.xori %21, %23 : vector<8x512xi32>
    %c1073741824_i32 = arith.constant 1073741824 : i32
    %25 = vector.broadcast %c1073741824_i32 : i32 to vector<8x512xi32>
    %26 = arith.cmpi uge, %24, %25 : vector<8x512xi32>
    %c0_1 = arith.constant 0 : index
    %c0_2 = arith.constant 0 : index
    %27 = vector.load %arg2[%c0_1, %c0_2] : memref<8x512xf32, #tpu.memory_space<vmem>>, vector<8x512xf32>
    %cst = arith.constant 1.33333337 : f32
    %28 = vector.broadcast %cst : f32 to vector<8x512xf32>
    %29 = arith.mulf %27, %28 : vector<8x512xf32>
    %cst_3 = arith.constant 0.000000e+00 : f32
    %30 = vector.broadcast %cst_3 : f32 to vector<8x512xf32>
    %31 = arith.select %26, %29, %30 : vector<8x512xi1>, vector<8x512xf32>
    %c0_4 = arith.constant 0 : index
    %c0_5 = arith.constant 0 : index
    %32 = vector.load %arg3[%c0_4, %c0_5] : memref<8x512xf32, #tpu.memory_space<vmem>>, vector<8x512xf32>
    tpu.vector_store %arg3[%c0_4, %c0_5], %31 {strides = array<i32>} : memref<8x512xf32, #tpu.memory_space<vmem>>, vector<8x512xf32>,
    return
  }
  func.func @transform_0(%arg0: i32, %arg1: memref<1xi32, #tpu.memory_space<smem>>) -> (i32, i32) {
    %c0_i32 = arith.constant 0 : i32
    %c0_i32_0 = arith.constant 0 : i32
    return %arg0, %c0_i32 : i32, i32
  }
  func.func @transform_1(%arg0: i32, %arg1: memref<1xi32, #tpu.memory_space<smem>>) -> (i32, i32) {
    %c0_i32 = arith.constant 0 : i32
    %c0_i32_0 = arith.constant 0 : i32
    return %arg0, %c0_i32 : i32, i32
  }
}

</mosaic_0001>

<bundles_post_ra>
// kernel: tpu_custom_call.1
= control target key start
LH: loop header
LB: loop body
LE: loop exit
PB: predicated region body
PF: predicated region fallthrough
CT: control target
= control target key end

     0   :  { %8 = vsyncpa [#allocation5], 0  ;;  %s184_s0 = inlined_call_operand.<no memory space> [shape: s32[1], index: 0, kind: input, shape index: {}]   ;;  %s185_s1 = inlined_call_operand.hbm [shape: f32[8,512], index: 1, kind: input, shape index: {}]   ;;  %s186_s2 = inlined_call_operand.hbm [shape: f32[8,512], index: 2, kind: output, shape index: {}]  }
   0x1   :  { %9 = vsyncpa [#allocation6], 0  ;;  %s158_s9 = smov [#allocation4]  }
   0x2   :  { %s16_s10 = sshll.u32 %s158_s9, 4  ;;  %s17_s10 = int_to_ptr.vmem [resolvable:$true] %s16_s10 }
   0x3   :  { %s122_s11 = scalar_lea.vmem %s17_s10, 512  ;;  %p127_p1 = scmp.lt.s32.totalorder %s17_s10, %s17_s10 }
   0x4   :  { %p123_p0 = scmp.ne.s32.totalorder %s17_s10, %s122_s11  ;;  %p128_p2 = scmp.lt.s32.totalorder %s122_s11, %s122_s11 }
   0x6   :  { %p129_p3 = por %p128_p2, %p127_p1 }
   0x8   :  { %p130_p4 = pnand %p129_p3, %p123_p0 }
   0xa   :  { %133 = shalt.err (!%p130_p4)
}
   0xb   :  { %19 = dma.hbm_to_vmem [thread:$0]  %s185_s1, 512, %s17_s10, [#allocation5]  }
   0xc   :  { %154 = dma.done.wait [#allocation5], 512  }
   0xd   :  { %155 = vsyncadd [#allocation5], 4294966784  ;;  %v23_v0 = vlaneseq  ;;  %s39_s16 = smul.u32 2654435769, %s184_s0  ;;  %v81_v37 = vld [vmem:[#allocation4] sm:$0xff]  ;;  %v82_v39 = vld [vmem:[#allocation4 + $0x8] sm:$0xff] }
   0xe   :  { %v83_v41 = vld [vmem:[#allocation4 + $0x10] sm:$0xff]  ;;  %v84_v43 = vld [vmem:[#allocation4 + $0x18] sm:$0xff]  ;;  %v85_v46 = vmul.f32 1.3333334, %v81_v37  ;;  %v86_v47 = vmul.f32 1.3333334, %v82_v39 }
   0xf   :  { %v24_v1 = vshrl.u32 %v23_v0, 7  ;;  %v26_v2 = vand.u32 127, %v23_v0  ;;  %v40_v7 = vstv %s39_s16  ;;  %v87_v52 = vmul.f32 1.3333334, %v83_v41  ;;  %s159_s0 = smov [#allocation7]  }
  0x10   :  { %v88_v53 = vmul.f32 1.3333334, %v84_v43  ;;  %s103_s1 = sshll.u32 %s159_s0, 4  ;;  %s104_s1 = int_to_ptr.vmem [resolvable:$true] %s103_s1 }
  0x11   :  { %v33_v3 = vmul.u32 512, %v24_v1  ;;  %v27_v4 = vadd.s32 128, %v26_v2  ;;  %v28_v5 = vadd.s32 256, %v26_v2  ;;  %v29_v6 = vadd.s32 384, %v26_v2  ;;  %s134_s17 = scalar_lea.vmem %s104_s1, 512  ;;  %p139_p6 = scmp.lt.s32.totalorder %s104_s1, %s104_s1 }
  0x12   :  { %p135_p5 = scmp.ne.s32.totalorder %s104_s1, %s134_s17  ;;  %p140_p7 = scmp.lt.s32.totalorder %s134_s17, %s134_s17 }
  0x13   :  { %v34_v8 = vadd.s32 %v33_v3, %v26_v2  ;;  %v35_v9 = vadd.s32 %v33_v3, %v27_v4  ;;  %v36_v10 = vadd.s32 %v33_v3, %v28_v5  ;;  %v37_v11 = vadd.s32 %v33_v3, %v29_v6 }
  0x14   :  { %p141_p8 = por %p140_p7, %p139_p6 }
  0x15   :  { %v41_v12 = vadd.s32 %v40_v7, %v34_v8  ;;  %v42_v13 = vadd.s32 %v40_v7, %v35_v9  ;;  %v43_v14 = vadd.s32 %v40_v7, %v36_v10  ;;  %v44_v15 = vadd.s32 %v40_v7, %v37_v11 }
  0x16   :  { %p142_p9 = pnand %p141_p8, %p135_p5 }
  0x17   :  { %v45_v16 = vshrl.u32 %v41_v12, 16  ;;  %v46_v17 = vshrl.u32 %v42_v13, 16  ;;  %v47_v18 = vshrl.u32 %v43_v14, 16  ;;  %v48_v19 = vshrl.u32 %v44_v15, 16 }
  0x19   :  { %v49_v20 = vxor.u32 %v45_v16, %v41_v12  ;;  %v50_v21 = vxor.u32 %v46_v17, %v42_v13  ;;  %v51_v22 = vxor.u32 %v47_v18, %v43_v14  ;;  %v52_v23 = vxor.u32 %v48_v19, %v44_v15 }
  0x1b   :  { %v53_v24 = vmul.u32 2246822507, %v49_v20  ;;  %v54_v25 = vmul.u32 2246822507, %v50_v21 }
  0x1c   :  { %v55_v26 = vmul.u32 2246822507, %v51_v22  ;;  %v56_v27 = vmul.u32 2246822507, %v52_v23 }
  0x1d   :  { %v57_v28 = vshrl.u32 %v53_v24, 13  ;;  %v58_v29 = vshrl.u32 %v54_v25, 13 }
  0x1e   :  { %v59_v30 = vshrl.u32 %v55_v26, 13  ;;  %v60_v31 = vshrl.u32 %v56_v27, 13 }
  0x1f   :  { %v61_v32 = vxor.u32 %v57_v28, %v53_v24  ;;  %v62_v33 = vxor.u32 %v58_v29, %v54_v25 }
  0x20   :  { %v63_v34 = vxor.u32 %v59_v30, %v55_v26  ;;  %v64_v35 = vxor.u32 %v60_v31, %v56_v27 }
  0x21   :  { %v65_v36 = vmul.u32 3266489909, %v61_v32  ;;  %v66_v38 = vmul.u32 3266489909, %v62_v33 }
  0x22   :  { %v67_v40 = vmul.u32 3266489909, %v63_v34  ;;  %v68_v42 = vmul.u32 3266489909, %v64_v35 }
  0x23   :  { %v69_v44 = vshrl.u32 %v65_v36, 16  ;;  %v70_v45 = vshrl.u32 %v66_v38, 16 }
  0x24   :  { %v71_v48 = vshrl.u32 %v67_v40, 16  ;;  %v72_v49 = vshrl.u32 %v68_v42, 16 }
  0x25   :  { %v73_v50 = vxor.u32 %v69_v44, %v65_v36  ;;  %v74_v51 = vxor.u32 %v70_v45, %v66_v38 }
  0x26   :  { %v75_v54 = vxor.u32 %v71_v48, %v67_v40  ;;  %v76_v55 = vxor.u32 %v72_v49, %v68_v42 }
  0x27   :  { %vm77_vm0 = vcmp.ge.u32.totalorder %v73_v50, 1073741824  ;;  %vm78_vm1 = vcmp.ge.u32.totalorder %v74_v51, 1073741824 }
  0x28   :  { %v89_v56 = vsel %vm77_vm0, %v85_v46, 0.0  ;;  %v90_v57 = vsel %vm78_vm1, %v86_v47, 0.0  ;;  %vm79_vm2 = vcmp.ge.u32.totalorder %v75_v54, 1073741824  ;;  %vm80_vm3 = vcmp.ge.u32.totalorder %v76_v55, 1073741824 }
  0x29   :  { %93 = vst [vmem:[#allocation7] sm:$0xff] %v89_v56  ;;  %94 = vst [vmem:[#allocation7 + $0x8] sm:$0xff] %v90_v57  ;;  %v91_v58 = vsel %vm79_vm2, %v87_v52, 0.0  ;;  %v92_v59 = vsel %vm80_vm3, %v88_v53, 0.0 }
  0x2a   :  { %95 = vst [vmem:[#allocation7 + $0x10] sm:$0xff] %v91_v58  ;;  %96 = vst [vmem:[#allocation7 + $0x18] sm:$0xff] %v92_v59 }
  0x2b   :  { %145 = shalt.err (!%p142_p9)
}
  0x2c   :  { %106 = dma.vmem_to_hbm [thread:$0]  %s104_s1, 512, %s186_s2, [#allocation6]  }
  0x2d   :  { %156 = dma.done.wait [#allocation6], 512  }
  0x2e   :  { %157 = vsyncadd [#allocation6], 4294966784 }
  0x2f   :  { %110 = vsyncpa [#allocation5], 1 }
  0x30   :  { %111 = vsyncpa [#allocation6], 1 }

</bundles_post_ra>
